<compile_context>
chip_gen: v5e
topology: v5e:2x2
jax: 0.10.0
libtpu: 0.0.40
codegen_flags: <defaults>
</compile_context>

<pallas_src>
import functools

import jax
import jax.numpy as jnp
import numpy as np
from jax.experimental import pallas as pl
from jax.experimental.pallas import tpu as pltpu


# ----------------------------- helpers (plain python) -----------------------------

def make_divisible(value, divisor=8, min_value=None, min_ratio=0.9):
    if min_value is None:
        min_value = divisor
    new_value = max(min_value, int(value + divisor / 2) // divisor * divisor)
    if new_value < min_ratio * value:
        new_value += divisor
    return new_value


def _round_up(x, m):
    return (x + m - 1) // m * m


def _choose_block_batch(B, C, HWp, x_itemsize, block_budget_bytes, max_tb=16):
    """Images per grid step: keep the double-buffered x/out blocks in budget while
    leaving >= ~4 grid steps per TensorCore (2 TCs on v7x) for pipelining."""
    def steps(t):
        return -(-B // t)

    feasible = []
    for t in range(1, min(B, max_tb) + 1):
        blk = 2 * t * C * HWp * (x_itemsize + 4)      # dbl-buffered x in + f32 out
        if blk > block_budget_bytes:
            break
        if steps(t) < min(8, B):
            continue
        feasible.append(t)
    if not feasible:
        return 1
    best = max(feasible)
    # prefer an even grid length (v7x: 2 TensorCores) if it does not halve the block
    even = [t for t in feasible if steps(t) % 2 == 0]
    if even and 2 * max(even) >= best:
        best = max(even)
    return best


# --------------------------------- Pallas kernel ----------------------------------

def _dsa_kernel(x_ref,        # (TB, C, HWp)  x dtype (f32 exact / bf16 fast)
                wv_ref,       # (Cp, C)  stacked [resConv; conv_sp; 0-pad] (compute dtype)
                w1_ref,       # (Cr, C)  conv1_ch
                w2_ref,       # (C, Cr)  conv2_ch
                wskr_ref,     # (Cr, C)  sk.fc_reduce
                bnsb_ref,     # (Cr, 2)  packed folded-BN [scale, shift]
                wsks0_ref,    # (C, Cr)  sk.fc_select rows 0:C   (path 0)
                wsks1_ref,    # (C, Cr)  sk.fc_select rows C:2C  (path 1)
                o_ref,        # (TB, C, HWp) f32
                *, hw_true, approx):
    TB, C, HWp = x_ref.shape
    f32 = jnp.float32
    inv_hw = 1.0 / hw_true
    padded = HWp != hw_true

    # ---- hoisted constant loads (once per grid step, not per image) ----
    wv = wv_ref[...]
    w1 = w1_ref[...]
    w2 = w2_ref[...]
    wskr = wskr_ref[...]
    bnsb = bnsb_ref[...]
    bns = bnsb[:, 0:1]
    bnb = bnsb[:, 1:2]
    wsks0 = wsks0_ref[...]
    wsks1 = wsks1_ref[...]
    cdt = wv.dtype

    if padded:
        lane_idx = jax.lax.broadcasted_iota(jnp.int32, (1, HWp), 1)
        lane_mask = lane_idx < hw_true
        mask_f = lane_mask.astype(f32)

    # ---- phase 1: global average pool for all TB images -> gap^T (TB, C) ----
    # (padded lanes are zero, so the sum is over the true spatial extent)
    gap_t_c = jnp.sum(x_ref[...].astype(f32), axis=2) * inv_hw           # (TB, C)

    # ---- phase 2: channel attention + SelectiveKernel, batched over TB images ----
    # contract over C on both operands: (Cr,C) x (TB,C) -> (Cr,TB)
    h1 = jnp.maximum(
        jax.lax.dot_general(w1, gap_t_c, (((1,), (1,)), ((), ())),
                            preferred_element_type=f32), 0.0)            # (Cr, TB)
    ch = jax.nn.sigmoid(jnp.dot(w2, h1, preferred_element_type=f32))     # (C, TB)

    # SelectiveKernel pooling collapsed on the rank-1 structure:
    #   mean_s(sequence + parallel) = ch*(1 + 1/HW) + 1/HW   (sum_s sp_attn == 1)
    sk_in = ch * (1.0 + inv_hw) + inv_hw                                 # (C, TB)
    hk = jnp.maximum(
        jnp.dot(wskr, sk_in, preferred_element_type=f32) * bns + bnb, 0.0)  # (Cr, TB)
    sel0 = jnp.dot(wsks0, hk, preferred_element_type=f32)                # (C, TB)
    sel1 = jnp.dot(wsks1, hk, preferred_element_type=f32)                # (C, TB)
    m = jnp.maximum(sel0, sel1)
    e0 = jnp.exp(sel0 - m)
    e1 = jnp.exp(sel1 - m)
    inv01 = pl.reciprocal(e0 + e1, approx=approx)
    a0 = e0 * inv01
    a1 = e1 * inv01
    # sq_pr = a0*sequence + a1*parallel = alpha*sp_attn + beta   (never materialized)
    alpha_all = a0 * ch + a1                                             # (C, TB) > 0
    beta_all = a1 * ch                                                   # (C, TB)

    # ---- phase 3: heavy per-image spatial pass (static unroll over TB) ----
    # TODO(synk): for very large TB a fori_loop with dynamic lane slicing would bound
    # live ranges better; TB is kept small enough that the static unroll is fine.
    for t in range(TB):
        xt = x_ref[t]                                                    # (C, HWp)
        alpha = alpha_all[:, t:t + 1]                                    # (C, 1)
        beta = beta_all[:, t:t + 1]                                      # (C, 1)

        # fused resConv + conv_sp: a single MXU pass over x per image
        vo = jnp.dot(wv, xt.astype(cdt), preferred_element_type=f32)     # (Cp, HWp)
        value = vo[0:C, :]                                               # (C, HWp)
        sp_logits = vo[C:C + 1, :]                                       # (1, HWp)

        # spatial softmax (padded lanes masked out)
        if padded:
            sp_logits = jnp.where(lane_mask, sp_logits, -1e30)
        smax = jnp.max(sp_logits, axis=1, keepdims=True)
        sexp = jnp.exp(sp_logits - smax)
        if padded:
            sexp = sexp * mask_f
        sp_attn = sexp * pl.reciprocal(jnp.sum(sexp, axis=1, keepdims=True),
                                       approx=approx)                    # (1, HWp)

        # global softmax max from the rank-1 structure (alpha > 0, sp_attn >= 0):
        #   max_s sq_pr[c,s] = alpha_c * max(sp_attn) + beta_c
        sp_max = jnp.max(sp_attn, axis=1, keepdims=True)                 # (1, 1)
        fmax = jnp.max(alpha * sp_max + beta, keepdims=True)             # (1, 1)

        # global softmax over C*HW with the normalization folded into the reduction
        # TODO(synk): on v6e/v7x sq_pr/fe could be computed in bf16 (bf16 EUP/VPU).
        sq_pr = alpha * sp_attn + beta                                   # (C, HWp)
        fe = jnp.exp(sq_pr - fmax)
        if padded:
            fe = fe * mask_f
        num = jnp.sum(fe * value, axis=1, keepdims=True)                 # (C, 1)
        attn_vec = num * pl.reciprocal(jnp.sum(fe, keepdims=True), approx=approx)

        # out = attn_vec (broadcast over spatial) + x
        o_ref[t] = attn_vec + xt.astype(f32)


# ----------------------------------- wrapper ---------------------------------------

def dsa_ex_forward(x_nchw, params, *, compute_dtype=jnp.bfloat16, approx_recip=True,
                   block_batch=None):
    """x_nchw: (B, C, H, W) float32.  Returns (B, C, H, W) float32.

    compute_dtype : dtype of the fused resConv/conv_sp MXU matmul (and of the
                    streamed x in the bf16 fast path).
    approx_recip  : route softmax reciprocals to the EUP approximate path.
    block_batch   : optional override of the images-per-grid-step heuristic.
    """
    B, C, H, W = x_nchw.shape
    HW = H * W
    HWp = _round_up(HW, 128)
    Cr = params["w1"].shape[0]

    cdt = jnp.dtype(compute_dtype)
    is_bf16 = cdt == jnp.dtype(jnp.bfloat16)
    # Fast path streams x in bf16: the kernel is HBM-bound, so halving x's input
    # bytes is a direct win; the residual add re-expands to f32 in-kernel.
    x_dtype = jnp.bfloat16 if is_bf16 else jnp.float32

    # Stacked [resConv ; conv_sp ; zero pad]; Cp rounded to the sublane pack of the
    # compute dtype (16 for bf16, 8 for f32).
    # TODO(synk): C not a multiple of 8 would make the vo[0:C]/vo[C:C+1] sublane
    # slices unaligned; pad C in that case.
    Cp = _round_up(C + 1, 16 if is_bf16 else 8)
    wv = jnp.concatenate(
        [params["wres"], params["wsp"], jnp.zeros((Cp - C - 1, C), jnp.float32)],
        axis=0).astype(cdt)

    # fc_select split into its two path blocks (avoids an unaligned sublane slice);
    # folded BN scale/shift packed into one (Cr, 2) operand.
    wsks0 = params["wsks"][0:C, :]
    wsks1 = params["wsks"][C:2 * C, :]
    bnsb = jnp.concatenate([params["bn_scale"], params["bn_shift"]], axis=1)

    # x -> (B, C, HWp): lane-pad the flattened spatial axis to a 128-multiple so all
    # (C, HW) passes (and the output stores) are lane-dense; the kernel masks the
    # padded lanes out of both softmaxes.
    # TODO(synk): a (C, B*HW) layout would let one MXU pass cover the whole block,
    # but is only net-positive if the surrounding graph adopts that layout.
    x2 = x_nchw.reshape(B, C, HW).astype(x_dtype)
    if HWp != HW:
        x2 = jnp.pad(x2, ((0, 0), (0, 0), (0, HWp - HW)))

    # Generation-aware VMEM budget (v7x: 64 MiB per TC; v5e/v6e: 128 MiB).
    try:
        vmem_cap = int(pltpu.get_tpu_info().vmem_capacity_bytes)
    except Exception:
        vmem_cap = 64 << 20                                  # conservative default
    vmem_limit = int(max(32 << 20, min(int(vmem_cap * 0.82), vmem_cap - (8 << 20))))

    x_itemsize = jnp.dtype(x_dtype).itemsize
    weight_bytes = 2 * (Cp * C * cdt.itemsize + (2 * Cr * C + 3 * C * Cr + 2 * Cr) * 4)
    temp_bytes = 2 * (Cp + 4 * C) * HWp * 4                  # ~2 images of live temps
    block_budget = vmem_limit - weight_bytes - temp_bytes - (6 << 20)

    if block_batch is not None:
        TB = max(1, min(int(block_batch), B))
    else:
        TB = _choose_block_batch(B, C, HWp, x_itemsize, block_budget)

    n_steps = -(-B // TB)
    Bp = n_steps * TB
    if Bp != B:                                              # batch-pad to a TB multiple
        x2 = jnp.pad(x2, ((0, Bp - B), (0, 0), (0, 0)))

    def const(shape):
        return pl.BlockSpec(shape, lambda b: (0,) * len(shape))

    kern = functools.partial(_dsa_kernel, hw_true=HW, approx=bool(approx_recip))

    out = pl.pallas_call(
        kern,
        out_shape=jax.ShapeDtypeStruct((Bp, C, HWp), jnp.float32),
        grid_spec=pltpu.PrefetchScalarGridSpec(
            num_scalar_prefetch=0,
            grid=(n_steps,),
            in_specs=[
                pl.BlockSpec((TB, C, HWp), lambda b: (b, 0, 0)),   # x block
                const((Cp, C)),       # wv (resConv + conv_sp)
                const((Cr, C)),       # w1 (conv1_ch)
                const((C, Cr)),       # w2 (conv2_ch)
                const((Cr, C)),       # wskr (sk.fc_reduce)
                const((Cr, 2)),       # packed BN scale/shift
                const((C, Cr)),       # wsks path-0
                const((C, Cr)),       # wsks path-1
            ],
            out_specs=pl.BlockSpec((TB, C, HWp), lambda b: (b, 0, 0)),
        ),
        compiler_params=pltpu.CompilerParams(
            dimension_semantics=("parallel",),
            vmem_limit_bytes=vmem_limit),
    )(x2, wv, params["w1"], params["w2"], params["wskr"], bnsb, wsks0, wsks1)

    return out[:B, :, :HW].reshape(B, C, H, W)


# ---------------------------- pure-JAX reference (check) ---------------------------

def dsa_ex_reference(x_nchw, params):
    B, C, H, W = x_nchw.shape
    xr = x_nchw.reshape(B, C, H * W)
    w1, w2, wsp = params["w1"], params["w2"], params["wsp"]
    wskr, wsks, wres = params["wskr"], params["wsks"], params["wres"]
    bns, bnb = params["bn_scale"][:, 0], params["bn_shift"][:, 0]

    gap = xr.mean(-1)                                        # (B, C)
    h1 = jax.nn.relu(gap @ w1.T)                             # (B, Cr)
    ch = jax.nn.sigmoid(h1 @ w2.T)                           # (B, C)

    sp_logits = jnp.einsum("oc,bcs->bos", wsp, xr)[:, 0]     # (B, HW)
    sp = jax.nn.softmax(sp_logits, axis=-1)

    seq = ch[:, :, None] * sp[:, None, :]                    # (B, C, HW)
    par = ch[:, :, None] + sp[:, None, :]

    skin = (seq + par).mean(-1)                              # (B, C)
    hk = jax.nn.relu((skin @ wskr.T) * bns[None, :] + bnb[None, :])
    sel = (hk @ wsks.T).reshape(B, 2, C)
    ska = jax.nn.softmax(sel, axis=1)                        # (B, 2, C)

    sq_pr = seq * ska[:, 0, :, None] + par * ska[:, 1, :, None]
    self_attn = jax.nn.softmax(sq_pr.reshape(B, C * H * W), axis=1).reshape(B, C, H * W)
    value = jnp.einsum("oc,bcs->bos", wres, xr)
    attn_vec = (self_attn * value).sum(-1)                   # (B, C)
    return (attn_vec[:, :, None] + xr).reshape(B, C, H, W)


# ------------------------------------- main ----------------------------------------

def init_params(key, in_channels):
    C = in_channels
    Cr = make_divisible(C // 2, 8)
    ks = jax.random.split(key, 8)

    def kaiming(k, shape, fan_in):
        return jax.random.normal(k, shape, jnp.float32) * np.sqrt(2.0 / fan_in)

    eps = 1e-5
    gamma = 1.0 + 0.1 * jax.random.normal(ks[6], (Cr,), jnp.float32)
    beta = 0.1 * jax.random.normal(ks[7], (Cr,), jnp.float32)
    run_mean = jnp.zeros((Cr,), jnp.float32)
    run_var = jnp.ones((Cr,), jnp.float32)
    bn_scale = gamma / jnp.sqrt(run_var + eps)
    bn_shift = beta - run_mean * bn_scale

    return {
        "w1":   kaiming(ks[0], (Cr, C), C),        # conv1_ch: C -> Cr
        "w2":   kaiming(ks[1], (C, Cr), Cr),       # conv2_ch: Cr -> C
        "wsp":  kaiming(ks[2], (1, C), C),         # conv_sp:  C -> 1
        "wskr": kaiming(ks[3], (Cr, C), C),        # sk.fc_reduce
        "wsks": kaiming(ks[4], (2 * C, Cr), Cr),   # sk.fc_select
        "wres": kaiming(ks[5], (C, C), C),         # resConv
        "bn_scale": bn_scale.reshape(Cr, 1),
        "bn_shift": bn_shift.reshape(Cr, 1),
    }, Cr


if __name__ == "__main__":
    root = jax.random.PRNGKey(0)

    def run_case(key, B, C, H, W, block_batch=None, run_fast=True):
        kx, kp = jax.random.split(key)
        x = jax.random.normal(kx, (B, C, H, W), jnp.float32)
        params, _ = init_params(kp, C)
        ref = dsa_ex_reference(x, params)

        # Exact-math path (f32 MXU, exact reciprocal): tight check of the algebra.
        out_exact = jax.block_until_ready(
            dsa_ex_forward(x, params, compute_dtype=jnp.float32,
                           approx_recip=False, block_batch=block_batch))
        assert out_exact.shape == (B, C, H, W)
        np.testing.assert_allclose(np.asarray(out_exact), np.asarray(ref),
                                   rtol=1e-4, atol=1e-5)

        if run_fast:
            # Fast path (bf16 x + fused matmul, EUP approx reciprocal): loose tolerance.
            out_fast = jax.block_until_ready(
                dsa_ex_forward(x, params, block_batch=block_batch))
            assert out_fast.shape == (B, C, H, W)
            np.testing.assert_allclose(np.asarray(out_fast), np.asarray(ref),
                                       rtol=5e-2, atol=5e-2)

    k1, k2 = jax.random.split(root)
    # Non-128-multiple spatial size: exercises the lane-padding / masked-softmax path.
    run_case(k1, B=2, C=16, H=14, W=14, run_fast=True)
    # Lane-aligned spatial size with TB=2: exercises the batched per-block matvec
    # chain and the per-image column extraction.
    run_case(k2, B=4, C=16, H=16, W=16, block_batch=2, run_fast=False)

    print("KERNEL_OK")
</pallas_src>

<mosaic_0001>
module attributes {stable_mosaic.version = 11 : i64} {
  func.func @_dsa_kernel(%arg0: i32, %arg1: memref<1x16x256xf32, #tpu.memory_space<vmem>>, %arg2: memref<24x16xf32, #tpu.memory_space<vmem>>, %arg3: memref<8x16xf32, #tpu.memory_space<vmem>>, %arg4: memref<16x8xf32, #tpu.memory_space<vmem>>, %arg5: memref<8x16xf32, #tpu.memory_space<vmem>>, %arg6: memref<8x2xf32, #tpu.memory_space<vmem>>, %arg7: memref<16x8xf32, #tpu.memory_space<vmem>>, %arg8: memref<16x8xf32, #tpu.memory_space<vmem>>, %arg9: memref<1x16x256xf32, #tpu.memory_space<vmem>>) attributes {dimension_semantics = [#tpu.dimension_semantics<parallel>], iteration_bounds = array<i64: 2>, scalar_prefetch = 0 : i64, scratch_operands = 0 : i64, tpu.core_type = #tpu.core_type<tc>, window_params = [{transform_indices = @transform_0, window_bounds = array<i64: 1, 16, 256>}, {pipeline_mode = #tpu.pipeline_mode<synchronous>, transform_indices = @transform_1, window_bounds = array<i64: 24, 16>}, {pipeline_mode = #tpu.pipeline_mode<synchronous>, transform_indices = @transform_2, window_bounds = array<i64: 8, 16>}, {pipeline_mode = #tpu.pipeline_mode<synchronous>, transform_indices = @transform_3, window_bounds = array<i64: 16, 8>}, {pipeline_mode = #tpu.pipeline_mode<synchronous>, transform_indices = @transform_4, window_bounds = array<i64: 8, 16>}, {pipeline_mode = #tpu.pipeline_mode<synchronous>, transform_indices = @transform_5, window_bounds = array<i64: 8, 2>}, {pipeline_mode = #tpu.pipeline_mode<synchronous>, transform_indices = @transform_6, window_bounds = array<i64: 16, 8>}, {pipeline_mode = #tpu.pipeline_mode<synchronous>, transform_indices = @transform_7, window_bounds = array<i64: 16, 8>}, {transform_indices = @transform_8, window_bounds = array<i64: 1, 16, 256>}]} {
    %c0 = arith.constant 0 : index
    %c0_0 = arith.constant 0 : index
    %0 = vector.load %arg2[%c0, %c0_0] : memref<24x16xf32, #tpu.memory_space<vmem>>, vector<24x16xf32>
    %c0_1 = arith.constant 0 : index
    %c0_2 = arith.constant 0 : index
    %1 = vector.load %arg3[%c0_1, %c0_2] : memref<8x16xf32, #tpu.memory_space<vmem>>, vector<8x16xf32>
    %c0_3 = arith.constant 0 : index
    %c0_4 = arith.constant 0 : index
    %2 = vector.load %arg4[%c0_3, %c0_4] : memref<16x8xf32, #tpu.memory_space<vmem>>, vector<16x8xf32>
    %c0_5 = arith.constant 0 : index
    %c0_6 = arith.constant 0 : index
    %3 = vector.load %arg5[%c0_5, %c0_6] : memref<8x16xf32, #tpu.memory_space<vmem>>, vector<8x16xf32>
    %c0_7 = arith.constant 0 : index
    %c0_8 = arith.constant 0 : index
    %4 = vector.load %arg6[%c0_7, %c0_8] : memref<8x2xf32, #tpu.memory_space<vmem>>, vector<8x2xf32>
    %5 = vector.extract_strided_slice %4 {offsets = [0, 0], sizes = [8, 1], strides = [1, 1]} : vector<8x2xf32> to vector<8x1xf32>
    %6 = vector.extract_strided_slice %4 {offsets = [0, 1], sizes = [8, 1], strides = [1, 1]} : vector<8x2xf32> to vector<8x1xf32>
    %c0_9 = arith.constant 0 : index
    %c0_10 = arith.constant 0 : index
    %7 = vector.load %arg7[%c0_9, %c0_10] : memref<16x8xf32, #tpu.memory_space<vmem>>, vector<16x8xf32>
    %c0_11 = arith.constant 0 : index
    %c0_12 = arith.constant 0 : index
    %8 = vector.load %arg8[%c0_11, %c0_12] : memref<16x8xf32, #tpu.memory_space<vmem>>, vector<16x8xf32>
    %9 = tpu.iota {dimensions = array<i32: 1>} : vector<1x256xi32>
    %c196_i32 = arith.constant 196 : i32
    %10 = vector.broadcast %c196_i32 : i32 to vector<1x256xi32>
    %11 = arith.cmpi slt, %9, %10 : vector<1x256xi32>
    %12 = arith.extui %11 : vector<1x256xi1> to vector<1x256xi32>
    %13 = arith.sitofp %12 : vector<1x256xi32> to vector<1x256xf32>
    %c0_13 = arith.constant 0 : index
    %c0_14 = arith.constant 0 : index
    %c0_15 = arith.constant 0 : index
    %14 = vector.load %arg1[%c0_13, %c0_14, %c0_15] : memref<1x16x256xf32, #tpu.memory_space<vmem>>, vector<1x16x256xf32>
    %cst = arith.constant dense<0.000000e+00> : vector<1x16xf32>
    %15 = vector.multi_reduction <add>, %14, %cst [2] : vector<1x16x256xf32> to vector<1x16xf32>
    %cst_16 = arith.constant 0.00510204071 : f32
    %16 = vector.broadcast %cst_16 : f32 to vector<1x16xf32>
    %17 = arith.mulf %15, %16 : vector<1x16xf32>
    %cst_17 = arith.constant dense<0.000000e+00> : vector<8x1xf32>
    %18 = tpu.matmul %1, %17, %cst_17 {dimension_numbers = #tpu.dot_dimension_numbers<[1], [1], [0], [0], [0, 0, 1, 0], [], []>} : vector<8x16xf32>, vector<1x16xf32>, vector<8x1xf32> -> vector<8x1xf32>
    %cst_18 = arith.constant 0.000000e+00 : f32
    %19 = vector.broadcast %cst_18 : f32 to vector<8x1xf32>
    %20 = arith.maximumf %18, %19 : vector<8x1xf32>
    %cst_19 = arith.constant dense<0.000000e+00> : vector<16x1xf32>
    %21 = tpu.matmul %2, %20, %cst_19 {dimension_numbers = #tpu.dot_dimension_numbers<[1], [0], [0], [1], [0, 0, 1, 1], [], []>} : vector<16x8xf32>, vector<8x1xf32>, vector<16x1xf32> -> vector<16x1xf32>
    %22 = arith.negf %21 : vector<16x1xf32>
    %23 = math.exp %22 : vector<16x1xf32>
    %cst_20 = arith.constant 1.000000e+00 : f32
    %24 = vector.broadcast %cst_20 : f32 to vector<16x1xf32>
    %25 = arith.addf %24, %23 : vector<16x1xf32>
    %26 = arith.divf %24, %25 : vector<16x1xf32>
    %cst_21 = arith.constant 1.00510204 : f32
    %27 = vector.broadcast %cst_21 : f32 to vector<16x1xf32>
    %28 = arith.mulf %26, %27 : vector<16x1xf32>
    %cst_22 = arith.constant 0.00510204071 : f32
    %29 = vector.broadcast %cst_22 : f32 to vector<16x1xf32>
    %30 = arith.addf %28, %29 : vector<16x1xf32>
    %cst_23 = arith.constant dense<0.000000e+00> : vector<8x1xf32>
    %31 = tpu.matmul %3, %30, %cst_23 {dimension_numbers = #tpu.dot_dimension_numbers<[1], [0], [0], [1], [0, 0, 1, 1], [], []>} : vector<8x16xf32>, vector<16x1xf32>, vector<8x1xf32> -> vector<8x1xf32>
    %32 = arith.mulf %31, %5 : vector<8x1xf32>
    %33 = arith.addf %32, %6 : vector<8x1xf32>
    %cst_24 = arith.constant 0.000000e+00 : f32
    %34 = vector.broadcast %cst_24 : f32 to vector<8x1xf32>
    %35 = arith.maximumf %33, %34 : vector<8x1xf32>
    %cst_25 = arith.constant dense<0.000000e+00> : vector<16x1xf32>
    %36 = tpu.matmul %7, %35, %cst_25 {dimension_numbers = #tpu.dot_dimension_numbers<[1], [0], [0], [1], [0, 0, 1, 1], [], []>} : vector<16x8xf32>, vector<8x1xf32>, vector<16x1xf32> -> vector<16x1xf32>
    %cst_26 = arith.constant dense<0.000000e+00> : vector<16x1xf32>
    %37 = tpu.matmul %8, %35, %cst_26 {dimension_numbers = #tpu.dot_dimension_numbers<[1], [0], [0], [1], [0, 0, 1, 1], [], []>} : vector<16x8xf32>, vector<8x1xf32>, vector<16x1xf32> -> vector<16x1xf32>
    %38 = arith.maximumf %36, %37 : vector<16x1xf32>
    %39 = arith.subf %36, %38 : vector<16x1xf32>
    %40 = math.exp %39 : vector<16x1xf32>
    %41 = arith.subf %37, %38 : vector<16x1xf32>
    %42 = math.exp %41 : vector<16x1xf32>
    %43 = arith.addf %40, %42 : vector<16x1xf32>
    %44 = tpu.reciprocal %43 : vector<16x1xf32> -> vector<16x1xf32>
    %45 = arith.mulf %40, %44 : vector<16x1xf32>
    %46 = arith.mulf %42, %44 : vector<16x1xf32>
    %47 = arith.mulf %45, %26 : vector<16x1xf32>
    %48 = arith.addf %47, %46 : vector<16x1xf32>
    %49 = arith.mulf %46, %26 : vector<16x1xf32>
    %c0_27 = arith.constant 0 : index
    %c0_28 = arith.constant 0 : index
    %c0_29 = arith.constant 0 : index
    %50 = vector.load %arg1[%c0_27, %c0_28, %c0_29] : memref<1x16x256xf32, #tpu.memory_space<vmem>>, vector<1x16x256xf32>
    %51 = vector.shape_cast %50 : vector<1x16x256xf32> to vector<16x256xf32>
    %cst_30 = arith.constant dense<0.000000e+00> : vector<24x256xf32>
    %52 = tpu.matmul %0, %51, %cst_30 {dimension_numbers = #tpu.dot_dimension_numbers<[1], [0], [0], [1], [0, 0, 1, 1], [], []>} : vector<24x16xf32>, vector<16x256xf32>, vector<24x256xf32> -> vector<24x256xf32>
    %53 = vector.extract_strided_slice %52 {offsets = [0, 0], sizes = [16, 256], strides = [1, 1]} : vector<24x256xf32> to vector<16x256xf32>
    %54 = vector.extract_strided_slice %52 {offsets = [16, 0], sizes = [1, 256], strides = [1, 1]} : vector<24x256xf32> to vector<1x256xf32>
    %cst_31 = arith.constant -1.000000e+30 : f32
    %55 = vector.broadcast %cst_31 : f32 to vector<1x256xf32>
    %56 = arith.select %11, %54, %55 : vector<1x256xi1>, vector<1x256xf32>
    %cst_32 = arith.constant dense<0xFF800000> : vector<1xf32>
    %57 = vector.multi_reduction <maximumf>, %56, %cst_32 [1] : vector<1x256xf32> to vector<1xf32>
    %58 = vector.shape_cast %57 : vector<1xf32> to vector<1x1xf32>
    %59 = vector.broadcast %58 : vector<1x1xf32> to vector<1x256xf32>
    %60 = arith.subf %56, %59 : vector<1x256xf32>
    %61 = math.exp %60 : vector<1x256xf32>
    %62 = arith.mulf %61, %13 : vector<1x256xf32>
    %cst_33 = arith.constant dense<0.000000e+00> : vector<1xf32>
    %63 = vector.multi_reduction <add>, %62, %cst_33 [1] : vector<1x256xf32> to vector<1xf32>
    %64 = vector.shape_cast %63 : vector<1xf32> to vector<1x1xf32>
    %65 = tpu.reciprocal %64 : vector<1x1xf32> -> vector<1x1xf32>
    %66 = vector.broadcast %65 : vector<1x1xf32> to vector<1x256xf32>
    %67 = arith.mulf %62, %66 : vector<1x256xf32>
    %cst_34 = arith.constant dense<0xFF800000> : vector<1xf32>
    %68 = vector.multi_reduction <maximumf>, %67, %cst_34 [1] : vector<1x256xf32> to vector<1xf32>
    %69 = vector.shape_cast %68 : vector<1xf32> to vector<1x1xf32>
    %70 = vector.broadcast %69 : vector<1x1xf32> to vector<16x1xf32>
    %71 = arith.mulf %48, %70 : vector<16x1xf32>
    %72 = arith.addf %71, %49 : vector<16x1xf32>
    %73 = vector.shape_cast %72 : vector<16x1xf32> to vector<1x16x1xf32>
    %cst_35 = arith.constant dense<0xFF800000> : vector<1xf32>
    %74 = vector.multi_reduction <maximumf>, %73, %cst_35 [1, 2] : vector<1x16x1xf32> to vector<1xf32>
    %75 = vector.shape_cast %74 : vector<1xf32> to vector<1x1x1xf32>
    %76 = vector.extract %75[0, 0, 0] : f32 from vector<1x1x1xf32>
    %77 = vector.broadcast %76 : f32 to vector<1x1xf32>
    %78 = vector.broadcast %48 : vector<16x1xf32> to vector<16x256xf32>
    %79 = vector.broadcast %67 : vector<1x256xf32> to vector<16x256xf32>
    %80 = arith.mulf %78, %79 : vector<16x256xf32>
    %81 = vector.broadcast %49 : vector<16x1xf32> to vector<16x256xf32>
    %82 = arith.addf %80, %81 : vector<16x256xf32>
    %83 = vector.broadcast %77 : vector<1x1xf32> to vector<16x256xf32>
    %84 = arith.subf %82, %83 : vector<16x256xf32>
    %85 = math.exp %84 : vector<16x256xf32>
    %86 = vector.broadcast %13 : vector<1x256xf32> to vector<16x256xf32>
    %87 = arith.mulf %85, %86 : vector<16x256xf32>
    %88 = arith.mulf %87, %53 : vector<16x256xf32>
    %cst_36 = arith.constant dense<0.000000e+00> : vector<16xf32>
    %89 = vector.multi_reduction <add>, %88, %cst_36 [1] : vector<16x256xf32> to vector<16xf32>
    %90 = vector.shape_cast %89 : vector<16xf32> to vector<16x1xf32>
    %91 = vector.shape_cast %87 : vector<16x256xf32> to vector<1x16x256xf32>
    %cst_37 = arith.constant dense<0.000000e+00> : vector<1xf32>
    %92 = vector.multi_reduction <add>, %91, %cst_37 [1, 2] : vector<1x16x256xf32> to vector<1xf32>
    %93 = vector.shape_cast %92 : vector<1xf32> to vector<1x1x1xf32>
    %94 = vector.extract %93[0, 0, 0] : f32 from vector<1x1x1xf32>
    %95 = vector.broadcast %94 : f32 to vector<1x1xf32>
    %96 = tpu.reciprocal %95 : vector<1x1xf32> -> vector<1x1xf32>
    %97 = vector.broadcast %96 : vector<1x1xf32> to vector<16x1xf32>
    %98 = arith.mulf %90, %97 : vector<16x1xf32>
    %99 = vector.broadcast %98 : vector<16x1xf32> to vector<16x256xf32>
    %100 = arith.addf %99, %51 : vector<16x256xf32>
    %c0_38 = arith.constant 0 : index
    %c0_39 = arith.constant 0 : index
    %c0_40 = arith.constant 0 : index
    %101 = vector.load %arg9[%c0_38, %c0_39, %c0_40] : memref<1x16x256xf32, #tpu.memory_space<vmem>>, vector<1x16x256xf32>
    %102 = vector.shape_cast %101 : vector<1x16x256xf32> to vector<16x256xf32>
    %103 = vector.shape_cast %100 : vector<16x256xf32> to vector<1x16x256xf32>
    tpu.vector_store %arg9[%c0_38, %c0_39, %c0_40], %103 {strides = array<i32>} : memref<1x16x256xf32, #tpu.memory_space<vmem>>, vector<1x16x256xf32>,
    return
  }
  func.func @transform_0(%arg0: i32) -> (i32, i32, i32) {
    %c0_i32 = arith.constant 0 : i32
    %c0_i32_0 = arith.constant 0 : i32
    %c0_i32_1 = arith.constant 0 : i32
    return %arg0, %c0_i32, %c0_i32_0 : i32, i32, i32
  }
  func.func @transform_1(%arg0: i32) -> (i32, i32) {
    %c0_i32 = arith.constant 0 : i32
    %c0_i32_0 = arith.constant 0 : i32
    %c0_i32_1 = arith.constant 0 : i32
    return %c0_i32, %c0_i32_0 : i32, i32
  }
  func.func @transform_2(%arg0: i32) -> (i32, i32) {
    %c0_i32 = arith.constant 0 : i32
    %c0_i32_0 = arith.constant 0 : i32
    %c0_i32_1 = arith.constant 0 : i32
    return %c0_i32, %c0_i32_0 : i32, i32
  }
  func.func @transform_3(%arg0: i32) -> (i32, i32) {
    %c0_i32 = arith.constant 0 : i32
    %c0_i32_0 = arith.constant 0 : i32
    %c0_i32_1 = arith.constant 0 : i32
    return %c0_i32, %c0_i32_0 : i32, i32
  }
  func.func @transform_4(%arg0: i32) -> (i32, i32) {
    %c0_i32 = arith.constant 0 : i32
    %c0_i32_0 = arith.constant 0 : i32
    %c0_i32_1 = arith.constant 0 : i32
    return %c0_i32, %c0_i32_0 : i32, i32
  }
  func.func @transform_5(%arg0: i32) -> (i32, i32) {
    %c0_i32 = arith.constant 0 : i32
    %c0_i32_0 = arith.constant 0 : i32
    %c0_i32_1 = arith.constant 0 : i32
    return %c0_i32, %c0_i32_0 : i32, i32
  }
  func.func @transform_6(%arg0: i32) -> (i32, i32) {
    %c0_i32 = arith.constant 0 : i32
    %c0_i32_0 = arith.constant 0 : i32
    %c0_i32_1 = arith.constant 0 : i32
    return %c0_i32, %c0_i32_0 : i32, i32
  }
  func.func @transform_7(%arg0: i32) -> (i32, i32) {
    %c0_i32 = arith.constant 0 : i32
    %c0_i32_0 = arith.constant 0 : i32
    %c0_i32_1 = arith.constant 0 : i32
    return %c0_i32, %c0_i32_0 : i32, i32
  }
  func.func @transform_8(%arg0: i32) -> (i32, i32, i32) {
    %c0_i32 = arith.constant 0 : i32
    %c0_i32_0 = arith.constant 0 : i32
    %c0_i32_1 = arith.constant 0 : i32
    return %arg0, %c0_i32, %c0_i32_0 : i32, i32, i32
  }
}

</mosaic_0001>

<bundles_post_ra>
// kernel: tpu_custom_call.1
= control target key start
LH: loop header
LB: loop body
LE: loop exit
PB: predicated region body
PF: predicated region fallthrough
CT: control target
= control target key end

     0   :  { %13 = vsyncpa [#allocation3], 0  ;;  %s1429_s0 = inlined_call_operand.hbm [shape: f32[2,16,256], index: 0, kind: input, shape index: {}]   ;;  %s1430_s1 = inlined_call_operand.vmem [shape: f32[24,16], index: 1, kind: input, shape index: {}]   ;;  %s1431_s2 = inlined_call_operand.vmem [shape: f32[8,16], index: 2, kind: input, shape index: {}]   ;;  %s1432_s3 = inlined_call_operand.vmem [shape: f32[16,8], index: 3, kind: input, shape index: {}]   ;;  %s1433_s4 = inlined_call_operand.vmem [shape: f32[8,16], index: 4, kind: input, shape index: {}]   ;;  %s1434_s5 = inlined_call_operand.vmem [shape: f32[8,2], index: 5, kind: input, shape index: {}]   ;;  %s1435_s6 = inlined_call_operand.vmem [shape: f32[16,8], index: 6, kind: input, shape index: {}]   ;;  %s1436_s7 = inlined_call_operand.vmem [shape: f32[16,8], index: 7, kind: input, shape index: {}]   ;;  %s1437_s8 = inlined_call_operand.hbm [shape: f32[2,16,256], index: 8, kind: output, shape index: {}]  }
   0x1   :  { %15 = vsyncpa [#allocation3 + $0x1], 0 }
   0x2   :  { %16 = vsyncpa [#allocation4], 0 }
   0x3   :  { %18 = vsyncpa [#allocation4 + $0x1], 0  ;;  %s1181_s27 = smov 0   ;;  %s1183_s28 = smov 0  }
   0x4   :  { %s1185_s29 = smov 0   ;;  %s1187_s30 = smov 0  }
   0x5 LB: > { %1439 = sst [smem:[#allocation8_spill]] %s1123_s29  ;;  %s1202_s9 = sadd.s32 4294967295, %s1127_s30   ;;  %s1127_s30 = sphi %s1187_s30, %s1451_s30   ;;  %s1123_s29 = sphi %s1185_s29, %s1448_s29   ;;  %s1119_s28 = sphi %s1183_s28, %s1450_s28   ;;  %s1115_s27 = sphi %s1181_s27, %s1449_s27  }
   0x6   : > { %s903_s10 = sadd.s32 4294967294, %s1127_s30   ;;  %s1206_s11 = sadd.s32 1, %s1127_s30  }
   0x7   : > { %s31_s12 = sadd.s32 1, %s1123_s29  ;;  %s28_s13 = ssub.s32 %s1127_s30, %s1206_s11 }
   0x8   : > { %p38_p0 = scmp.ne.s32.totalorder %s1123_s29, %s1119_s28  ;;  %p29_p1 = scmp.eq.s32.totalorder %s28_s13, 0 }
   0x9   : > { %p39_p2 = scmp.eq.s32.totalorder %s1127_s30, 0  ;;  %p44_p3 = scmp.ne.s32.totalorder %s1119_s28, %s1115_s27 }
   0xa   : > { %p45_p4 = scmp.eq.s32.totalorder %s1202_s9, 0  ;;  %p215_p7 = scmp.eq.s32.totalorder %s1202_s9, 1 }
   0xb   : > { %s1218_s14 = scalar_select %p29_p1, %s1123_s29, %s31_s12  }
   0xc   : > { %p1220_p5 = por %p39_p2, %p38_p0  ;;  %p1224_p6 = por %p45_p4, %p44_p3 }
   0xd   : > { %1440 = sst [smem:[#allocation9_spill]] %s1218_s14  ;;  %p221_p8 = scmp.eq.s32.totalorder %s903_s10, 1 }
   0xe   : > { %p951_p10 = scmp.lt.s32.totalorder %s1127_s30, 2  ;;  %p1231_p11 = por %p215_p7, %p38_p0 }
   0xf   : > { %p1235_p12 = por %p221_p8, %p44_p3  ;;  %s262_s19 = sand.u32 1, %s1123_s29  }
  0x10   : > { %s933_s20 = sshll.u32 %s1127_s30, 5  ;;  %s906_s21 = sshll.u32 %s262_s19, 5 }
  0x11   : > { %s271_s24 = scalar_lea.hbm %s1429_s0, %s933_s20  ;;  %s266_s26 = scalar_lea.vmem [#allocation2], %s906_s21 }
  0x12   : > { %s272_s25 = sshll.u32 %s271_s24, 4  ;;  %s274_s10 = sshll.u32 %s266_s26, 4  ;;  %s273_s25 = int_to_ptr.hbm [resolvable:$true] %s272_s25  ;;  %s275_s10 = int_to_ptr.vmem [resolvable:$true] %s274_s10 }
  0x13   : > { %p1246_p13 = pnand %p951_p10, %p1220_p5  ;;  %p909_p0 = scmp.ge.s32.totalorder %s1127_s30, 1 }
  0x14   : > { %p282_p1 = scmp.lt.s32.totalorder %s1127_s30, 3  ;;  %s263_s13 = scalar_lea.sflag [#allocation3], %s262_s19 }
  0x15   : > { %s1031_s14 = sshra.s32 %s273_s25, 4  ;;  %p1035_p3 = pneg %p1246_p13  ;;  %s1032_s14 = int_to_ptr.hbm [resolvable:$true] %s1031_s14 }
  0x16   : > { %s1033_s29 = scalar_lea.hbm %s1032_s14, 32  ;;  %s1038_s15 = scalar_lea.hbm %s1429_s0, 64 }
  0x17   : > { %p1034_p2 = scmp.ne.s32.totalorder %s1032_s14, %s1033_s29  ;;  %p1039_p5 = scmp.lt.s32.totalorder %s1032_s14, %s1429_s0 }
  0x18   : > { %p1040_p8 = scmp.lt.s32.totalorder %s1038_s15, %s1033_s29 }
  0x19   : > { %p1036_p4 = pnand %p1035_p3, %p1034_p2 }
  0x1a   : > { %p1041_p10 = por %p1040_p8, %p1039_p5 }
  0x1b   : > { %p1037_p7 = pneg %p1036_p4 }
  0x1d   : > { %p1042_p9 = pnand %p1041_p10, %p1037_p7 }
  0x1f   : > { %1045 = shalt.err (!%p1042_p9)
}
  0x20   : > { %s1129_s19 = smov 256   ;;  %s1130_s24 = smov 16  }
  0x21   : > { %946 = dma.hbm_to_vmem [thread:$0]  (!%p1246_p13), %s273_s25, 512, %s275_s10, %s263_s13, %s1129_s19, %s1129_s19, %s1130_s24  }
  0x22   : > { %p283_p2 = pnand %p909_p0, %p282_p1 }
  0x23   : > { %s1267_s26 = sand.u32 (!%p283_p2), 1, %s1119_s28  }
  0x24   : > { %286 = sbr.rel (%p283_p2) target bundleno = 1203 (0x4b3), region = 52  ;;  %s910_s29 = sshll.u32 (!%p283_p2), %s1267_s26, 5 }
  0x25   : > { %s289_s14 = scalar_lea.sflag (!%p283_p2), [#allocation3], %s1267_s26  ;;  %s292_s20 = scalar_lea.vmem (!%p283_p2), [#allocation2], %s910_s29 }
  0x29   : > { %1106 = dma.done.wait (%p1224_p6), %s289_s14, 512  }
  0x2a   : > { %1108 = vsyncadd (%p1224_p6), %s289_s14, 4294966784  ;;  %v1277_v0 = vld [vmem:[%s292_s20 + $0x18] sm:$0xff]  ;;  %v1279_v1 = vld [vmem:[%s292_s20 + $0x10] sm:$0xff]  ;;  %vm380_vm0 = vcmask 130048   ;;  %v338_v10 = vlaneseq  ;;  %vm364_vm1 = vcmask 130112   ;;  %vm662_vm3 = vcmask 1040384  }
  0x2b   : > { %v1281_v2 = vld [vmem:[%s292_s20 + $0x8] sm:$0xff]  ;;  %648 = vmatpush.msra.mxu0 %v1277_v0  ;;  %622 = vmatpush.msra.mxu1 %v1279_v1  ;;  %v1285_v3 = vld [vmem:[%s292_s20] sm:$0xff]  ;;  %v354_v6 = vadd.f32 %v1277_v0, %v1279_v1  ;;  %v328_v8 = vld [vmem:[%s1430_s1 + $0x10] sm:$0xff]  ;;  %vm385_vm4 = vcmask 64512   ;;  %v1131_v42 = vmov 0.0   ;;  %s1132_s10 = smov 127  }
  0x2c   : > { %v326_v4 = vld [vmem:[%s1430_s1] sm:$0xff]  ;;  %v351_v5 = vadd.f32 %v1281_v2, %v1285_v3  ;;  %v327_v7 = vld [vmem:[%s1430_s1 + $0x8] sm:$0xff]  ;;  %v339_v11 = vand.u32 127, %v338_v10  ;;  %s325_s21 = scalar_lea.vmem [#allocation5], %s910_s29  ;;  %s815_s22 = scalar_lea.sflag [#allocation4], %s1267_s26 }
  0x2d   : > { %649 = vmatpush.msra.mxu0 %v1281_v2  ;;  %623 = vmatpush.msra.mxu1 %v1285_v3  ;;  %v329_v20 = vld [vmem:[%s1431_s2] sm:$0xff]  ;;  %v331_v36 = vld [vmem:[%s1432_s3 + $0x8] sm:$0xff]  ;;  %s827_s15 = sshll.u32 %s325_s21, 4  ;;  %s1081_s14 = scalar_lea.hbm %s1437_s8, 64  ;;  %s828_s15 = int_to_ptr.vmem [resolvable:$true] %s827_s15 }
  0x2e   : > { %352 = vadd.xlane.f32.xlu0 %v351_v5  ;;  %925 = vmatmul.msk.f32.vlgmr.msra.gmra.mxu0 %vm380_vm0, %v326_v4  ;;  %v362_v13 = vadd.s32 4294967288, %v339_v11  ;;  %v340_v26 = vadd.s32 128, %v339_v11  ;;  %v330_v35 = vld [vmem:[%s1432_s3] sm:$0xff] }
  0x2f   : > { %922 = vmatmul.msk.f32.vlgmr.msra.gmra.mxu1 %vm380_vm0, %v326_v4  ;;  %v1340_v57 = vld [vmem:[%s1434_s5] sm:$0xff] }
  0x30   : > { %vm342_vm2 = vcmp.lt.s32.totalorder %v340_v26, 196 }
  0x31   : > { %v1332_v43 = vsel %vm342_vm2, 1.0, %v1131_v42 }
  0x36   : > { %355 = vadd.xlane.f32.xlu0 %v354_v6  ;;  %926 = vmatmul.msk.f32.gmra.mxu0 %vm380_vm0, %v327_v7 }
  0x37   : > { %923 = vmatmul.msk.f32.gmra.mxu1 %vm380_vm0, %v327_v7 }
  0x3e   : > { %927 = vmatmul.msk.f32.gmra.mxu0 %vm380_vm0, %v328_v8 }
  0x3f   : > { %924 = vmatmul.msk.f32.gmra.mxu1 %vm380_vm0, %v328_v8 }
  0xa1   : > { %v353_v9 = vpop.xlane.xlu0 %352 }
  0xa2   : > { %v357_v12 = vmul.f32 0.0051020407, %v353_v9 }
  0xa4   : > { %v361_v17 = vperm.slane %v357_v12, %v339_v11 }
  0xa9   : > { %v356_v14 = vpop.xlane.xlu0 %355 }
  0xaa   : > { %v358_v15 = vmul.f32 0.0051020407, %v356_v14 }
  0xab   : > { %v1308_v16 = vpop.f32.mrf.mxu0 }
  0xac   : > { %v363_v18 = vperm.slane %v358_v15, %v362_v13  ;;  %v1310_v19 = vpop.f32.mrf.mxu1 }
  0xae   : > { %v365_v21 = vsel %vm364_vm1, %v363_v18, %v361_v17 }
  0xaf   : > { %v379_v22 = vmul.f32 %v365_v21, %v329_v20 }
  0xb1   : > { %v381_v23 = vsel %vm380_vm0, %v379_v22, 0.0 }
  0xb2   : > { %382 = vadd.xlane.f32.xlu1 %v381_v23 }
  0xb3   : > { %v1316_v24 = vpop.f32.mrf.mxu0 }
  0xb4   : > { %v1318_v25 = vpop.f32.mrf.mxu1 }
  0xbb   : > { %v657_v27 = vpop.f32.mrf.mxu0 }
  0xbc   : > { %v661_v28 = vsel %vm342_vm2, %v657_v27, -1e+30  ;;  %v631_v29 = vpop.f32.mrf.mxu1 }
  0xbd   : > { %v663_v30 = vsel %vm662_vm3, %v631_v29, -inf  ;;  %v664_v31 = vsel %vm662_vm3, %v661_v28, -inf }
  0xbe   : > { %v665_v32 = vmax.f32 %v663_v30, %v664_v31 }
  0xc0   : > { %666 = vmax.xlane.f32.xlu2 %v665_v32 }
  0xcb   : > { %482 = vrot.lane.b32.xlu1 %v1340_v57, %s1132_s10  ;;  %s934_s10 = sshll.u32 %s1202_s9, 5 }
  0xcc   : > { %s826_s13 = scalar_lea.hbm %s1437_s8, %s934_s10 }
  0xcd   : > { %s829_s9 = sshll.u32 %s826_s13, 4  ;;  %s830_s9 = int_to_ptr.hbm [resolvable:$true] %s829_s9 }
  0xce   : > { %s1075_s23 = sshra.s32 %s830_s9, 4  ;;  %s1076_s23 = int_to_ptr.hbm [resolvable:$true] %s1075_s23 }
  0xcf   : > { %s1077_s29 = scalar_lea.hbm %s1076_s23, 32  ;;  %p1082_p0 = scmp.lt.s32.totalorder %s1076_s23, %s1437_s8 }
  0xd0   : > { %p1078_p6 = scmp.ne.s32.totalorder %s1076_s23, %s1077_s29  ;;  %p1083_p1 = scmp.lt.s32.totalorder %s1081_s14, %s1077_s29 }
  0xd2   : > { %p1079_p9 = pnand %p1078_p6, %p1231_p11  ;;  %p1084_p3 = por %p1083_p1, %p1082_p0 }
  0xd4   : > { %p1080_p13 = pneg %p1079_p9 }
  0xd6   : > { %p1085_p4 = pnand %p1084_p3, %p1080_p13 }
 0x125   : > { %v383_v33 = vpop.xlane.xlu1 %382 }
 0x126   : > { %v384_v34 = vmax.f32 %v383_v33, 0.0 }
 0x128   : > { %407 = vmatpush.msra.mxu2 %v384_v34 }
 0x129   : > { %913 = vmatmul.msk.f32.vlgmr.msra.gmra.mxu2 %vm385_vm4, %v330_v35 }
 0x131   : > { %914 = vmatmul.msk.f32.gmra.mxu2 %vm385_vm4, %v331_v36 }
 0x133   : > { %v667_v37 = vpop.xlane.xlu2 %666 }
 0x134   : > { %v668_v38 = vsub.f32 %v631_v29, %v667_v37  ;;  %v669_v39 = vsub.f32 %v661_v28, %v667_v37 }
 0x136   : > { %v670_v40 = vmul.f32 1.442695, %v668_v38  ;;  %v672_v41 = vmul.f32 1.442695, %v669_v39 }
 0x138   : > { %995 = vpow2.f32 %v670_v40 }
 0x139   : > { %997 = vpow2.f32 %v672_v41 }
 0x13e   : > { %v996_v44 = vpop.eup %995 }
 0x13f   : > { %v998_v45 = vpop.eup %997  ;;  %v676_v47 = vsel %vm662_vm3, %v996_v44, 0.0 }
 0x140   : > { %v675_v46 = vmul.f32 %v998_v45, %v1332_v43 }
 0x142   : > { %v677_v48 = vsel %vm662_vm3, %v675_v46, 0.0 }
 0x143   : > { %v678_v49 = vadd.f32 %v677_v48, %v676_v47 }
 0x145   : > { %679 = vadd.xlane.f32.xlu2 %v678_v49 }
 0x1ac   : > { %v409_v50 = vpop.f32.mrf.mxu2 }
 0x1ad   : > { %v915_v51 = vmul.f32 -1.442695, %v409_v50  ;;  %v334_v50 = vld [vmem:[%s1435_s6] sm:$0xff] }
 0x1af   : > { %999 = vpow2.f32 %v915_v51  ;;  %v336_v51 = vld [vmem:[%s1436_s7] sm:$0xff] }
 0x1b4   : > { %v412_v52 = vpop.f32.mrf.mxu2 }
 0x1b5   : > { %v1000_v53 = vpop.eup %999  ;;  %v916_v54 = vmul.f32 -1.442695, %v412_v52  ;;  %v335_v52 = vld [vmem:[%s1435_s6 + $0x8] sm:$0xff] }
 0x1b6   : > { %v421_v55 = vadd.f32 1.0, %v1000_v53  ;;  %v337_v53 = vld [vmem:[%s1436_s7 + $0x8] sm:$0xff] }
 0x1b7   : > { %1001 = vpow2.f32 %v916_v54  ;;  %v1133_v54 = vmov 0  }
 0x1b8   : > { %1003 = vrcp.f32 %v421_v55  ;;  %v680_v56 = vpop.xlane.xlu2 %679  ;;  %v434_v17 = vand.u32 2147483648, %v421_v55  ;;  %vm428_vm10 = vweird.f32 %v421_v55  ;;  %v432_v21 = vand.u32 2147483647, %v421_v55  ;;  %992 = vset.pattern.permute.xlu0 %v1133_v54  ;;  %994 = vset.pattern.permute.xlu1 %v1133_v54 }
 0x1b9   : > { %1005 = vrcp.f32 %v680_v56  ;;  %v692_v4 = vand.u32 2147483648, %v680_v56  ;;  %vm686_vm5 = vweird.f32 %v680_v56  ;;  %v690_v7 = vand.u32 2147483647, %v680_v56  ;;  %993 = vset.pattern.permute.xlu2 %v1133_v54 }
 0x1ba   : > { %v435_v32 = vor.u32 1.1754944e-38, %v434_v17  ;;  %vm433_vm14 = vcmp.eq.f32.partialorder %v432_v21, 8.507059e+37 }
 0x1bb   : > { %v693_v10 = vor.u32 1.1754944e-38, %v692_v4  ;;  %vm691_vm8 = vcmp.eq.f32.partialorder %v690_v7, 8.507059e+37 }
 0x1bd   : > { %v1002_v58 = vpop.eup %1001 }
 0x1be   : > { %v1004_v59 = vpop.eup %1003  ;;  %v422_v60 = vadd.f32 1.0, %v1002_v58 }
 0x1bf   : > { %v1006_v61 = vpop.eup %1005  ;;  %v424_v62 = vmul.f32 %v1004_v59, %v421_v55  ;;  %vm429_vm9 = vweird.f32 %v1004_v59 }
 0x1c0   : > { %1007 = vrcp.f32 %v422_v60  ;;  %v682_v63 = vmul.f32 %v1006_v61, %v680_v56  ;;  %vm687_vm6 = vweird.f32 %v1006_v61  ;;  %v449_v26 = vand.u32 2147483648, %v422_v60  ;;  %vm430_vm11 = vmor %vm428_vm10, %vm429_vm9 }
 0x1c1   : > { %v425_v5 = vsub.f32 1.0, %v424_v62  ;;  %vm688_vm7 = vmor %vm686_vm5, %vm687_vm6  ;;  %v447_v28 = vand.u32 2147483647, %v422_v60  ;;  %vm443_vm13 = vweird.f32 %v422_v60  ;;  %vm707_vm9 = vcmask 7168  }
 0x1c2   : > { %v683_v6 = vsub.f32 1.0, %v682_v63  ;;  %v450_v35 = vor.u32 1.1754944e-38, %v449_v26 }
 0x1c3   : > { %v426_v8 = vmul.f32 %v1004_v59, %v425_v5  ;;  %vm448_vm1 = vcmp.eq.f32.partialorder %v447_v28, 8.507059e+37 }
 0x1c4   : > { %v684_v9 = vmul.f32 %v1006_v61, %v683_v6 }
 0x1c5   : > { %v427_v14 = vadd.f32 %v1004_v59, %v426_v8 }
 0x1c6   : > { %v1008_v11 = vpop.eup %1007  ;;  %v685_v12 = vadd.f32 %v1006_v61, %v684_v9 }
 0x1c7   : > { %v439_v13 = vmul.f32 %v1008_v11, %v422_v60  ;;  %vm444_vm12 = vweird.f32 %v1008_v11  ;;  %v431_v29 = vsel %vm430_vm11, %v1004_v59, %v427_v14 }
 0x1c8   : > { %v689_v15 = vsel %vm688_vm7, %v1006_v61, %v685_v12  ;;  %vm445_vm15 = vmor %vm443_vm13, %vm444_vm12  ;;  %v1351_v36 = vsel %vm433_vm14, %v435_v32, %v431_v29 }
 0x1c9   : > { %v694_v18 = vsel %vm691_vm8, %v693_v10, %v689_v15  ;;  %v440_v20 = vsub.f32 1.0, %v439_v13  ;;  %v453_v40 = vmul.f32 1.005102, %v1351_v36 }
 0x1ca   : > { %v1343_v22 = vmul.f32 %v996_v44, %v694_v18  ;;  %v1345_v23 = vmul.f32 %v694_v18, %v675_v46  ;;  %v332_v44 = vld [vmem:[%s1433_s4] sm:$0xff]  ;;  %v483_v46 = vpop.permute.xlu1 %482 }
 0x1cb   : > { %v441_v27 = vmul.f32 %v1008_v11, %v440_v20  ;;  %v455_v42 = vadd.f32 0.0051020407, %v453_v40 }
 0x1cc   : > { %v697_v30 = vsel %vm662_vm3, %v1343_v22, -inf  ;;  %v698_v31 = vsel %vm662_vm3, %v1345_v23, -inf }
 0x1cd   : > { %v699_v33 = vmax.f32 %v697_v30, %v698_v31  ;;  %v442_v34 = vadd.f32 %v1008_v11, %v441_v27 }
 0x1cf   : > { %700 = vmax.xlane.f32.xlu0 %v699_v33  ;;  %v446_v37 = vsel %vm445_vm15, %v1008_v11, %v442_v34 }
 0x1d0   : > { %v1353_v38 = vsel %vm448_vm1, %v450_v35, %v446_v37 }
 0x1d1   : > { %v454_v39 = vmul.f32 1.005102, %v1353_v38 }
 0x1d3   : > { %v456_v41 = vadd.f32 0.0051020407, %v454_v39 }
 0x1d5   : > { %474 = vmatpush.msra.mxu3 %v456_v41 }
 0x1d7   : > { %475 = vmatpush.msra.mxu3 %v455_v42 }
 0x1d8   : > { %917 = vmatmul.msk.f32.vlgmr.msra.gmra.mxu3 %vm380_vm0, %v332_v44 }
 0x25b   : > { %v477_v45 = vpop.f32.mrf.mxu3 }
 0x25c   : > { %v480_v47 = vmul.f32 %v477_v45, %v1340_v57  ;;  %v701_v45 = vpop.xlane.xlu0 %700 }
 0x25e   : > { %v485_v48 = vadd.f32 %v483_v46, %v480_v47 }
 0x260   : > { %v486_v49 = vmax.f32 %v485_v48, 0.0 }
 0x262   : > { %508 = vmatpush.msrb.mxu2 %v486_v49  ;;  %537 = vmatpush.msrb.mxu3 %v486_v49  ;;  %v702_v49 = vperm.slane %v701_v45, 0 }
 0x263   : > { %918 = vmatmul.msk.f32.vlgmr.msrb.gmra.mxu2 %vm385_vm4, %v334_v50  ;;  %920 = vmatmul.msk.f32.vlgmr.msrb.gmra.mxu3 %vm385_vm4, %v336_v51 }
 0x26b   : > { %919 = vmatmul.msk.f32.gmra.mxu2 %vm385_vm4, %v335_v52  ;;  %921 = vmatmul.msk.f32.gmra.mxu3 %vm385_vm4, %v337_v53 }
 0x2e6   : > { %v510_v55 = vpop.f32.mrf.mxu2  ;;  %v539_v56 = vpop.f32.mrf.mxu3 }
 0x2e7   : > { %v545_v57 = vmax.f32 %v510_v55, %v539_v56 }
 0x2e9   : > { %v547_v58 = vsub.f32 %v510_v55, %v545_v57  ;;  %v553_v59 = vsub.f32 %v539_v56, %v545_v57 }
 0x2eb   : > { %v549_v60 = vmul.f32 1.442695, %v547_v58  ;;  %v555_v61 = vmul.f32 1.442695, %v553_v59 }
 0x2ed   : > { %1009 = vpow2.f32 %v549_v60 }
 0x2ee   : > { %1011 = vpow2.f32 %v555_v61  ;;  %v513_v62 = vpop.f32.mrf.mxu2  ;;  %v542_v63 = vpop.f32.mrf.mxu3 }
 0x2ef   : > { %v546_v4 = vmax.f32 %v513_v62, %v542_v63 }
 0x2f1   : > { %v548_v5 = vsub.f32 %v513_v62, %v546_v4  ;;  %v554_v6 = vsub.f32 %v542_v63, %v546_v4 }
 0x2f3   : > { %v1010_v7 = vpop.eup %1009  ;;  %v551_v8 = vmul.f32 1.442695, %v548_v5  ;;  %v557_v9 = vmul.f32 1.442695, %v554_v6 }
 0x2f4   : > { %v1012_v10 = vpop.eup %1011 }
 0x2f5   : > { %v559_v11 = vadd.f32 %v1012_v10, %v1010_v7  ;;  %1013 = vpow2.f32 %v551_v8 }
 0x2f6   : > { %1015 = vpow2.f32 %v557_v9 }
 0x2f7   : > { %1017 = vrcp.f32 %v559_v11  ;;  %v572_v20 = vand.u32 2147483648, %v559_v11  ;;  %v570_v26 = vand.u32 2147483647, %v559_v11  ;;  %vm566_vm2 = vweird.f32 %v559_v11 }
 0x2f9   : > { %v573_v29 = vor.u32 1.1754944e-38, %v572_v20  ;;  %vm571_vm4 = vcmp.eq.f32.partialorder %v570_v26, 8.507059e+37 }
 0x2fb   : > { %v1014_v12 = vpop.eup %1013 }
 0x2fc   : > { %v1016_v13 = vpop.eup %1015 }
 0x2fd   : > { %v1018_v14 = vpop.eup %1017  ;;  %v560_v15 = vadd.f32 %v1016_v13, %v1014_v12 }
 0x2fe   : > { %v562_v17 = vmul.f32 %v1018_v14, %v559_v11  ;;  %vm567_vm0 = vweird.f32 %v1018_v14  ;;  %v731_v11 = vperm.slane %v1345_v23, 0 }
 0x2ff   : > { %1019 = vrcp.f32 %v560_v15  ;;  %vm568_vm3 = vmor %vm566_vm2, %vm567_vm0  ;;  %v584_v35 = vand.u32 2147483647, %v560_v15  ;;  %v586_v37 = vand.u32 2147483648, %v560_v15  ;;  %vm580_vm6 = vweird.f32 %v560_v15 }
 0x300   : > { %v563_v18 = vsub.f32 1.0, %v562_v17 }
 0x301   : > { %v587_v46 = vor.u32 1.1754944e-38, %v586_v37  ;;  %vm585_vm8 = vcmp.eq.f32.partialorder %v584_v35, 8.507059e+37 }
 0x302   : > { %v564_v21 = vmul.f32 %v1018_v14, %v563_v18 }
 0x304   : > { %v565_v27 = vadd.f32 %v1018_v14, %v564_v21 }
 0x305   : > { %v1020_v28 = vpop.eup %1019 }
 0x306   : > { %v569_v30 = vsel %vm568_vm3, %v1018_v14, %v565_v27  ;;  %v576_v31 = vmul.f32 %v1020_v28, %v560_v15  ;;  %vm581_vm5 = vweird.f32 %v1020_v28 }
 0x307   : > { %v574_v32 = vsel %vm571_vm4, %v573_v29, %v569_v30  ;;  %vm582_vm7 = vmor %vm580_vm6, %vm581_vm5 }
 0x308   : > { %v589_v33 = vmul.f32 %v1010_v7, %v574_v32  ;;  %v577_v34 = vsub.f32 1.0, %v576_v31  ;;  %v591_v39 = vmul.f32 %v1012_v10, %v574_v32 }
 0x30a   : > { %v593_v40 = vmul.f32 %v589_v33, %v1351_v36  ;;  %v578_v41 = vmul.f32 %v1020_v28, %v577_v34  ;;  %v597_v55 = vmul.f32 %v591_v39, %v1351_v36 }
 0x30c   : > { %v595_v42 = vadd.f32 %v593_v40, %v591_v39  ;;  %v579_v44 = vadd.f32 %v1020_v28, %v578_v41 }
 0x30e   : > { %722 = vperm.xlu0 %992, %v595_v42   ;;  %v583_v47 = vsel %vm582_vm7, %v1020_v28, %v579_v44  ;;  %v703_v51 = vmul.f32 %v702_v49, %v595_v42 }
 0x30f   : > { %v588_v48 = vsel %vm585_vm8, %v587_v46, %v583_v47 }
 0x310   : > { %v590_v50 = vmul.f32 %v1014_v12, %v588_v48  ;;  %v592_v52 = vmul.f32 %v1016_v13, %v588_v48  ;;  %v705_v58 = vadd.f32 %v703_v51, %v597_v55 }
 0x312   : > { %v594_v53 = vmul.f32 %v590_v50, %v1353_v38  ;;  %v598_v57 = vmul.f32 %v592_v52, %v1353_v38  ;;  %v708_v60 = vsel %vm707_vm9, %v705_v58, -inf  ;;  %v730_v38 = vperm.slane %v1343_v22, 0 }
 0x314   : > { %v596_v54 = vadd.f32 %v594_v53, %v592_v52 }
 0x316   : > { %727 = vperm.xlu1 %994, %v596_v54   ;;  %v704_v56 = vmul.f32 %v702_v49, %v596_v54 }
 0x318   : > { %v706_v59 = vadd.f32 %v704_v56, %v598_v57 }
 0x31a   : > { %v709_v61 = vsel %vm707_vm9, %v706_v59, -inf }
 0x31b   : > { %v710_v62 = vmax.f32 %v708_v60, %v709_v61 }
 0x31d   : > { %711 = vmax.xlane.f32.xlu2 %v710_v62 }
 0x31e   : > { %743 = vperm.xlu1 %994, %v598_v57  }
 0x335   : > { %738 = vperm.xlu2 %993, %v597_v55  }
 0x380   : > { %v723_v10 = vpop.permute.xlu0 %722 }
 0x381   : > { %v732_v14 = vmul.f32 %v730_v38, %v723_v10  ;;  %v733_v15 = vmul.f32 %v731_v11, %v723_v10 }
 0x388   : > { %v728_v9 = vpop.permute.xlu1 %727 }
 0x389   : > { %v734_v17 = vmul.f32 %v730_v38, %v728_v9  ;;  %v735_v18 = vmul.f32 %v731_v11, %v728_v9 }
 0x390   : > { %v712_v63 = vpop.xlane.xlu2 %711  ;;  %v744_v12 = vpop.permute.xlu1 %743 }
 0x391   : > { %v713_v4 = vrot.slane %v712_v63, 4  ;;  %v748_v20 = vadd.f32 %v744_v12, %v734_v17  ;;  %v749_v21 = vadd.f32 %v744_v12, %v735_v18 }
 0x393   : > { %v714_v5 = vmax.f32 %v712_v63, %v713_v4 }
 0x395   : > { %v715_v6 = vrot.slane %v714_v5, 2 }
 0x397   : > { %v716_v7 = vmax.f32 %v714_v5, %v715_v6 }
 0x398   : > { %v739_v13 = vpop.permute.xlu2 %738 }
 0x399   : > { %v717_v8 = vrot.slane %v716_v7, 1  ;;  %v746_v26 = vadd.f32 %v739_v13, %v732_v14  ;;  %v747_v27 = vadd.f32 %v739_v13, %v733_v15 }
 0x39b   : > { %v718_v36 = vmax.f32 %v716_v7, %v717_v8 }
 0x39d   : > { %935 = vpush %v718_v36 }
 0x3ce   : > { %s936_s20 = spop %935 }
 0x3cf   : > { %v750_v28 = vstv %s936_s20 }
 0x3d0   : > { %v751_v29 = vsub.f32 %v746_v26, %v750_v28  ;;  %v752_v30 = vsub.f32 %v747_v27, %v750_v28  ;;  %v753_v31 = vsub.f32 %v748_v20, %v750_v28  ;;  %v754_v32 = vsub.f32 %v749_v21, %v750_v28 }
 0x3d2   : > { %v755_v33 = vmul.f32 1.442695, %v751_v29  ;;  %v757_v22 = vmul.f32 1.442695, %v752_v30  ;;  %v759_v34 = vmul.f32 1.442695, %v753_v31 }
 0x3d3   : > { %v761_v23 = vmul.f32 1.442695, %v754_v32 }
 0x3d4   : > { %1021 = vpow2.f32 %v755_v33 }
 0x3d5   : > { %1023 = vpow2.f32 %v757_v22 }
 0x3d6   : > { %1025 = vpow2.f32 %v759_v34 }
 0x3d7   : > { %1027 = vpow2.f32 %v761_v23 }
 0x3da   : > { %v1022_v35 = vpop.eup %1021 }
 0x3db   : > { %v1024_v37 = vpop.eup %1023  ;;  %v767_v44 = vmul.f32 %v1022_v35, %v1310_v19 }
 0x3dc   : > { %v1026_v39 = vpop.eup %1025  ;;  %v764_v40 = vmul.f32 %v1024_v37, %v1332_v43 }
 0x3dd   : > { %v1028_v41 = vpop.eup %1027  ;;  %v769_v47 = vmul.f32 %v1026_v39, %v1318_v25 }
 0x3de   : > { %v766_v42 = vmul.f32 %v1028_v41, %v1332_v43  ;;  %v768_v45 = vmul.f32 %v764_v40, %v1308_v16  ;;  %v777_v46 = vadd.f32 %v1022_v35, %v764_v40 }
 0x3e0   : > { %v770_v48 = vmul.f32 %v766_v42, %v1316_v24  ;;  %v771_v49 = vadd.f32 %v768_v45, %v767_v44  ;;  %v778_v50 = vadd.f32 %v1026_v39, %v777_v46 }
 0x3e2   : > { %v774_v51 = vadd.f32 %v770_v48, %v769_v47  ;;  %772 = vadd.xlane.f32.xlu1 %v771_v49  ;;  %v779_v52 = vadd.f32 %v778_v50, %v766_v42 }
 0x3e4   : > { %775 = vadd.xlane.f32.xlu0 %v774_v51  ;;  %780 = vadd.xlane.f32.xlu2 %v779_v52 }
 0x455   : > { %v773_v5 = vpop.xlane.xlu1 %772 }
 0x457   : > { %v781_v53 = vpop.xlane.xlu2 %780  ;;  %v776_v6 = vpop.xlane.xlu0 %775 }
 0x458   : > { %v782_v54 = vrot.slane %v781_v53, 4 }
 0x45a   : > { %v783_v55 = vadd.f32 %v782_v54, %v781_v53 }
 0x45c   : > { %v784_v43 = vrot.slane %v783_v55, 2 }
 0x45e   : > { %v785_v19 = vadd.f32 %v784_v43, %v783_v55 }
 0x460   : > { %v786_v56 = vrot.slane %v785_v19, 1 }
 0x462   : > { %v787_v16 = vadd.f32 %v786_v56, %v785_v19 }
 0x464   : > { %937 = vpush %v787_v16 }
 0x495   : > { %s938_s25 = spop %937 }
 0x496   : > { %v789_v25 = vstv %s938_s25 }
 0x497   : > { %1029 = vrcp.f32 %v789_v25  ;;  %v801_v59 = vand.u32 2147483648, %v789_v25  ;;  %v799_v61 = vand.u32 2147483647, %v789_v25  ;;  %vm795_vm11 = vweird.f32 %v789_v25 }
 0x499   : > { %v802_v63 = vor.u32 1.1754944e-38, %v801_v59  ;;  %vm800_vm13 = vcmp.eq.f32.partialorder %v799_v61, 8.507059e+37 }
 0x49d   : > { %v1030_v24 = vpop.eup %1029 }
 0x49e   : > { %v791_v57 = vmul.f32 %v1030_v24, %v789_v25  ;;  %vm796_vm10 = vweird.f32 %v1030_v24 }
 0x49f   : > { %vm797_vm12 = vmor %vm795_vm11, %vm796_vm10 }
 0x4a0   : > { %v792_v58 = vsub.f32 1.0, %v791_v57 }
 0x4a2   : > { %v793_v60 = vmul.f32 %v1030_v24, %v792_v58 }
 0x4a4   : > { %v794_v62 = vadd.f32 %v1030_v24, %v793_v60 }
 0x4a6   : > { %v798_v4 = vsel %vm797_vm12, %v1030_v24, %v794_v62 }
 0x4a7   : > { %v803_v7 = vsel %vm800_vm13, %v802_v63, %v798_v4 }
 0x4a8   : > { %v804_v8 = vmul.f32 %v803_v7, %v773_v5  ;;  %v805_v36 = vmul.f32 %v803_v7, %v776_v6 }
 0x4aa   : > { %v806_v9 = vadd.f32 %v804_v8, %v1285_v3  ;;  %v807_v10 = vadd.f32 %v804_v8, %v1281_v2  ;;  %v808_v38 = vadd.f32 %v805_v36, %v1279_v1  ;;  %v809_v11 = vadd.f32 %v805_v36, %v1277_v0 }
 0x4ac   : > { %810 = vst [vmem:[%s325_s21] sm:$0xff] %v806_v9 }
 0x4ad   : > { %811 = vst [vmem:[%s325_s21 + $0x8] sm:$0xff] %v807_v10 }
 0x4ae   : > { %812 = vst [vmem:[%s325_s21 + $0x10] sm:$0xff] %v808_v38 }
 0x4af   : > { %813 = vst [vmem:[%s325_s21 + $0x18] sm:$0xff] %v809_v11 }
 0x4b0   : > { %1088 = shalt.err (!%p1085_p4)
}
 0x4b1   : > { %s1134_s26 = smov 256   ;;  %s1135_s10 = smov 16  }
 0x4b2   : > { %941 = dma.vmem_to_hbm [thread:$0]  (%p1231_p11), %s828_s15, 512, %s830_s9, %s815_s22, %s1134_s26, %s1134_s26, %s1135_s10  }
 0x4b3 PF: > { %s844_s16 = sand.u32 1, %s1115_s27   ;;  %p1446_p7 = scmp.ge.s32.totalorder %s1127_s30, 2 }
 0x4b4   : > { %s845_s12 = scalar_lea.sflag [#allocation4], %s844_s16 }
 0x4b5   : > { %p948_p5 = pnand %p1446_p7, %p1235_p12 }
 0x4b7   : > { %p949_p8 = pneg %p948_p5 }
 0x4b9   : > { %1110 = dma.done.wait (%p949_p8), %s845_s12, 512  }
 0x4ba   : > { %1112 = vsyncadd (%p949_p8), %s845_s12, 4294966784  ;;  %s1447_s13 = sld [smem:[#allocation8_spill]]  ;;  %p21_p10 = scmp.ge.s32.totalorder %s1206_s11, 4  }
 0x4bb   : > { %s1448_s29 = sld [smem:[#allocation9_spill]]  ;;  %s1449_s27 = smov %s1119_s28 }
 0x4bc   : > { %s1451_s30 = smov %s1206_s11  ;;  %23 = sbr.rel (!%p21_p10) target bundleno = 5 (0x5), region = 97 }
 0x4c0   : > { %s1450_s28 = smov %s1447_s13 }
 0x4c1   :  { %851 = vsyncpa [#allocation3], 1 }
 0x4c2   :  { %853 = vsyncpa [#allocation3 + $0x1], 1 }
 0x4c3   :  { %854 = vsyncpa [#allocation4], 1 }
 0x4c4   :  { %856 = vsyncpa [#allocation4 + $0x1], 1 }

</bundles_post_ra>
